<compile_context>
chip_gen: v6e
topology: v6e:2x2x1
jax: 0.10.0
libtpu: 0.0.40
codegen_flags: <defaults>
</compile_context>

<pallas_src>
import math

import jax
import jax.numpy as jnp
from jax.experimental import pallas as pl
from jax.experimental.pallas import tpu as pltpu

LANE = 128       # feature dims padded to multiples of this (lane-dense stores)
ROW_TILE = 256   # node-row tile for the projection matmul
SRC_TILE = 256   # reduction tile over source rows in the aggregation
DST_TILE = 512   # destination-row tile in the aggregation (VMEM-safe on v7x)


def _vmem_limit_bytes():
    # v5e/v6e have 128 MiB VMEM -> allow up to 64 MiB scoped; v7x (64 MiB) -> 32 MiB.
    try:
        cap = pltpu.get_tpu_info().vmem_capacity_bytes
        return int(min(cap // 2, 64 * 1024 * 1024))
    except Exception:
        return 32 * 1024 * 1024


VMEM_LIMIT = _vmem_limit_bytes()


def _round_up(n, m):
    return ((n + m - 1) // m) * m


def _pad2d(x, rows, cols):
    r, c = x.shape
    if r == rows and c == cols:
        return x
    return jnp.pad(x, ((0, rows - r), (0, cols - c)))


# ---------------------------------------------------------------------------
# Kernel 1: tiled dense linear   y = x @ W + b   (bf16 in, bf16 out, f32 acc)
#   grid = (row tiles, lane tiles), both "parallel"; x is re-used across the
#   lane axis (index (i, 0) is j-independent -> no re-DMA), so feat[src] is
#   read from HBM once per source ntype.
# ---------------------------------------------------------------------------
def _linear_kernel(x_ref, w_ref, b_ref, o_ref):
    acc = jnp.dot(x_ref[...], w_ref[...], preferred_element_type=jnp.float32)
    o_ref[...] = (acc + b_ref[...]).astype(o_ref.dtype)


def linear_bf16(x_bf16, w_bf16, b_f32):
    n_pad, in_pad = x_bf16.shape
    width = w_bf16.shape[1]
    # largest 128-multiple divisor of width that is <= 512 (bounds W's VMEM footprint)
    n_tile = 512
    while width % n_tile:
        n_tile -= LANE
    grid = (n_pad // ROW_TILE, width // n_tile)
    return pl.pallas_call(
        _linear_kernel,
        out_shape=jax.ShapeDtypeStruct((n_pad, width), jnp.bfloat16),
        grid=grid,
        in_specs=[
            pl.BlockSpec((ROW_TILE, in_pad), lambda i, j: (i, 0)),
            pl.BlockSpec((in_pad, n_tile), lambda i, j: (0, j)),
            pl.BlockSpec((1, n_tile), lambda i, j: (0, j)),
        ],
        out_specs=pl.BlockSpec((ROW_TILE, n_tile), lambda i, j: (i, j)),
        compiler_params=pltpu.CompilerParams(
            dimension_semantics=("parallel", "parallel"),
            vmem_limit_bytes=VMEM_LIMIT,
        ),
    )(x_bf16, w_bf16, b_f32)


# ---------------------------------------------------------------------------
# Kernel 2: fused per-dst aggregation
#   h[dst] = sum over incoming etypes e of (1/deg_e) * (A_e @ Wh_e)
#   grid = (dst tiles ["parallel"], reduction steps ["arbitrary"]).
#   Each reduction step is one (etype, src-tile) pair: the int8 adjacency slab
#   is laid out in step order (block (i, k)); scalar-prefetch tables pick the
#   Wh row block and the inv-degree slot.  h[dst] is written once, lane-dense.
# ---------------------------------------------------------------------------
def _agg_kernel(wh_blk_tbl, einv_tbl, adj_ref, wh_ref, inv_ref, o_ref, acc_ref):
    k = pl.program_id(1)

    @pl.when(k == 0)
    def _():
        acc_ref[...] = jnp.zeros_like(acc_ref)

    adj = adj_ref[...].astype(jnp.bfloat16)            # int8 {0,1} -> bf16 for the MXU
    part = jnp.dot(adj, wh_ref[...], preferred_element_type=jnp.float32)
    acc_ref[...] += inv_ref[0] * part                  # exact per-etype 1/deg (f32)

    @pl.when(k == pl.num_programs(1) - 1)
    def _():
        o_ref[...] = acc_ref[...]


def aggregate_dst(wh_blk_tbl, einv_tbl, adj_slab_i8, wh_all_bf16, inv_deg, d_pad, out_pad):
    n_steps = int(wh_blk_tbl.shape[0])
    grid = (d_pad // DST_TILE, n_steps)
    return pl.pallas_call(
        _agg_kernel,
        out_shape=jax.ShapeDtypeStruct((d_pad, out_pad), jnp.float32),
        grid_spec=pltpu.PrefetchScalarGridSpec(
            num_scalar_prefetch=2,
            grid=grid,
            in_specs=[
                # adjacency slab columns are in step order -> block (i, k)
                pl.BlockSpec((DST_TILE, SRC_TILE), lambda i, k, wt, et: (i, k)),
                # Wh row slab of this step's (etype, src-tile)
                pl.BlockSpec((SRC_TILE, out_pad), lambda i, k, wt, et: (wt[k], 0)),
                # exact inverse degree of this step's etype for dst tile i
                pl.BlockSpec((1, DST_TILE, 1), lambda i, k, wt, et: (et[k], i, 0)),
            ],
            out_specs=pl.BlockSpec((DST_TILE, out_pad), lambda i, k, wt, et: (i, 0)),
            scratch_shapes=[pltpu.VMEM((DST_TILE, out_pad), jnp.float32)],
        ),
        compiler_params=pltpu.CompilerParams(
            dimension_semantics=("parallel", "arbitrary"),
            vmem_limit_bytes=VMEM_LIMIT,
        ),
    )(wh_blk_tbl, einv_tbl, adj_slab_i8, wh_all_bf16, inv_deg)


# ---------------------------------------------------------------------------
# Forward pass: HeteroRGCNLayer
# ---------------------------------------------------------------------------
def hetero_rgcn_layer(feat_dict, weights, graph):
    """feat_dict[ntype]: (n_nt, in_size) f32; weights[etype]: (W(in,out), b(out,));
    graph['adj'][(src, etype, dst)]: dense (n_dst, n_src) f32 {0,1}."""
    ntypes = graph["ntypes"]
    cetypes = graph["canonical_etypes"]
    num_nodes = graph["num_nodes"]
    adj = graph["adj"]

    in_size = next(iter(feat_dict.values())).shape[1]
    out_size = next(iter(weights.values()))[0].shape[1]
    in_pad = _round_up(in_size, LANE)
    out_pad = _round_up(out_size, LANE)
    ns_pad = {nt: _round_up(num_nodes[nt], SRC_TILE) for nt in ntypes}  # as-source rows
    nd_pad = {nt: _round_up(num_nodes[nt], DST_TILE) for nt in ntypes}  # as-dest rows

    # Padded bf16 source features (read once per source ntype by the projection).
    feat_p = {
        nt: _pad2d(feat_dict[nt], ns_pad[nt], in_pad).astype(jnp.bfloat16)
        for nt in ntypes
    }

    # ---- per-source fused projection: all etypes sharing a src in one wide matmul.
    by_src = {}
    for (src, ety, dst) in cetypes:
        by_src.setdefault(src, []).append(ety)

    col_of, wh_cat = {}, {}
    for src, etys in by_src.items():
        w_blocks, b_blocks = [], []
        for c, ety in enumerate(etys):
            w, b = weights[ety]
            w_blocks.append(_pad2d(w, in_pad, out_pad))
            b_blocks.append(jnp.pad(b, (0, out_pad - out_size)))
            col_of[ety] = c
        w_cat = jnp.concatenate(w_blocks, axis=1).astype(jnp.bfloat16)
        b_cat = jnp.concatenate(b_blocks, axis=0).astype(jnp.float32).reshape(1, -1)
        wh_cat[src] = linear_bf16(feat_p[src], w_cat, b_cat)   # bf16 (ns_pad, k*out_pad)

    # ---- restack Wh into per-etype row slabs: a single bf16 array lets ONE fused
    # aggregation call per dst ntype walk all of its incoming etypes via a row table.
    # NOTE: padded source rows of Wh hold the bias (0*W + b); harmless only because
    # the padded adjacency columns are guaranteed zero.
    slabs, row_blk_of = [], {}
    blk_acc = 0
    for (src, ety, dst) in cetypes:
        c = col_of[ety]
        slabs.append(wh_cat[src][:, c * out_pad:(c + 1) * out_pad])
        row_blk_of[ety] = blk_acc
        blk_acc += ns_pad[src] // SRC_TILE
    wh_all = jnp.concatenate(slabs, axis=0)                    # bf16 (sum ns_pad, out_pad)

    # ---- one fused aggregation per dst ntype (per-etype mean + cross-etype sum).
    incoming = {nt: [] for nt in ntypes}
    for (src, ety, dst) in cetypes:
        incoming[dst].append((src, ety))

    out = {}
    for nt in ntypes:
        inc = incoming[nt]
        if not inc:
            # TODO(synk): original DGL code would KeyError for ntypes with no
            # incoming edges; return zeros instead.
            out[nt] = jnp.zeros((num_nodes[nt], out_size), jnp.float32)
            continue
        n_d = num_nodes[nt]
        d_pad = nd_pad[nt]

        adj_parts, inv_parts, wh_blks, einvs = [], [], [], []
        for slot, (src, ety) in enumerate(inc):
            a = adj[(src, ety, nt)]
            adj_parts.append(_pad2d(a, d_pad, ns_pad[src]).astype(jnp.int8))
            deg = jnp.sum(a, axis=1)
            inv = 1.0 / jnp.maximum(deg, 1.0)                   # exact f32 mean norm
            inv_parts.append(jnp.pad(inv, (0, d_pad - n_d)).reshape(d_pad, 1))
            nb = ns_pad[src] // SRC_TILE
            wh_blks.extend(range(row_blk_of[ety], row_blk_of[ety] + nb))
            einvs.extend([slot] * nb)

        adj_slab = jnp.concatenate(adj_parts, axis=1)           # int8 (d_pad, steps*SRC_TILE)
        inv_deg = jnp.stack(inv_parts, axis=0)                  # f32 (k, d_pad, 1)
        wh_blk_tbl = jnp.asarray(wh_blks, dtype=jnp.int32)
        einv_tbl = jnp.asarray(einvs, dtype=jnp.int32)

        h_pad = aggregate_dst(wh_blk_tbl, einv_tbl, adj_slab, wh_all, inv_deg,
                              d_pad, out_pad)
        out[nt] = h_pad[:n_d, :out_size]
    return out


# Pure-JAX f32 reference (tolerance check against the bf16/int8 kernels).
def hetero_rgcn_layer_ref(feat_dict, weights, graph):
    out_size = next(iter(weights.values()))[0].shape[1]
    h = {
        nt: jnp.zeros((graph["num_nodes"][nt], out_size), jnp.float32)
        for nt in graph["ntypes"]
    }
    for (src, ety, dst) in graph["canonical_etypes"]:
        w, b = weights[ety]
        wh = feat_dict[src] @ w + b
        a = graph["adj"][(src, ety, dst)]
        deg = jnp.sum(a, axis=1, keepdims=True)
        h[dst] = h[dst] + (a @ wh) / jnp.maximum(deg, 1.0)
    return h


# ---------------------------------------------------------------------------
# Deterministic synthetic heterograph + parameters; run once.
# ---------------------------------------------------------------------------
if __name__ == "__main__":
    key = jax.random.PRNGKey(0)

    in_size, out_size = 128, 128        # lane-dense feature widths
    ntypes = ["A", "B"]
    num_nodes = {"A": 200, "B": 320}    # pads to 256/512 source rows, 512 dst rows
    cetypes = [("A", "ab", "B"), ("B", "ba", "A"), ("B", "bb", "B")]

    keys = jax.random.split(key, 8)
    feat_dict = {
        "A": jax.random.normal(keys[0], (num_nodes["A"], in_size), jnp.float32),
        "B": jax.random.normal(keys[1], (num_nodes["B"], in_size), jnp.float32),
    }
    adj = {}
    for i, (src, ety, dst) in enumerate(cetypes):
        adj[(src, ety, dst)] = jax.random.bernoulli(
            keys[2 + i], 0.3, (num_nodes[dst], num_nodes[src])
        ).astype(jnp.float32)

    bound = 1.0 / math.sqrt(in_size)    # torch nn.Linear default init
    weights = {}
    wkeys = jax.random.split(keys[6], 2 * len(cetypes))
    for i, (_, ety, _) in enumerate(cetypes):
        w = jax.random.uniform(
            wkeys[2 * i], (in_size, out_size), jnp.float32, -bound, bound
        )
        b = jax.random.uniform(
            wkeys[2 * i + 1], (out_size,), jnp.float32, -bound, bound
        )
        weights[ety] = (w, b)

    graph = {
        "ntypes": ntypes,
        "num_nodes": num_nodes,
        "canonical_etypes": cetypes,
        "adj": adj,
    }

    out = hetero_rgcn_layer(feat_dict, weights, graph)
    out = {nt: jax.block_until_ready(v) for nt, v in out.items()}

    ref = hetero_rgcn_layer_ref(feat_dict, weights, graph)
    for nt in ntypes:
        assert out[nt].shape == (num_nodes[nt], out_size)
        assert bool(jnp.all(jnp.isfinite(out[nt])))
        assert bool(jnp.allclose(out[nt], ref[nt], rtol=3e-2, atol=3e-2)), nt

    print("KERNEL_OK")
</pallas_src>

<mosaic_0001>
module attributes {stable_mosaic.version = 11 : i64} {
  func.func @_linear_kernel(%arg0: i32, %arg1: i32, %arg2: memref<256x128xbf16, #tpu.memory_space<vmem>>, %arg3: memref<128x128xbf16, #tpu.memory_space<vmem>>, %arg4: memref<1x128xf32, #tpu.memory_space<vmem>>, %arg5: memref<256x128xbf16, #tpu.memory_space<vmem>>) attributes {dimension_semantics = [#tpu.dimension_semantics<parallel>, #tpu.dimension_semantics<parallel>], iteration_bounds = array<i64: 1, 1>, scalar_prefetch = 0 : i64, scratch_operands = 0 : i64, tpu.core_type = #tpu.core_type<tc>, window_params = [{transform_indices = @transform_0, window_bounds = array<i64: 256, 128>}, {transform_indices = @transform_1, window_bounds = array<i64: 128, 128>}, {transform_indices = @transform_2, window_bounds = array<i64: 1, 128>}, {transform_indices = @transform_3, window_bounds = array<i64: 256, 128>}]} {
    %c0 = arith.constant 0 : index
    %c0_0 = arith.constant 0 : index
    %0 = vector.load %arg2[%c0, %c0_0] : memref<256x128xbf16, #tpu.memory_space<vmem>>, vector<256x128xbf16>
    %c0_1 = arith.constant 0 : index
    %c0_2 = arith.constant 0 : index
    %1 = vector.load %arg3[%c0_1, %c0_2] : memref<128x128xbf16, #tpu.memory_space<vmem>>, vector<128x128xbf16>
    %cst = arith.constant dense<0.000000e+00> : vector<256x128xf32>
    %2 = tpu.matmul %0, %1, %cst {dimension_numbers = #tpu.dot_dimension_numbers<[1], [0], [0], [1], [0, 0, 1, 1], [], []>} : vector<256x128xbf16>, vector<128x128xbf16>, vector<256x128xf32> -> vector<256x128xf32>
    %c0_3 = arith.constant 0 : index
    %c0_4 = arith.constant 0 : index
    %3 = vector.load %arg4[%c0_3, %c0_4] : memref<1x128xf32, #tpu.memory_space<vmem>>, vector<1x128xf32>
    %4 = vector.broadcast %3 : vector<1x128xf32> to vector<256x128xf32>
    %5 = arith.addf %2, %4 : vector<256x128xf32>
    %6 = arith.truncf %5 : vector<256x128xf32> to vector<256x128xbf16>
    %c0_5 = arith.constant 0 : index
    %c0_6 = arith.constant 0 : index
    %7 = vector.load %arg5[%c0_5, %c0_6] : memref<256x128xbf16, #tpu.memory_space<vmem>>, vector<256x128xbf16>
    tpu.vector_store %arg5[%c0_5, %c0_6], %6 {strides = array<i32>} : memref<256x128xbf16, #tpu.memory_space<vmem>>, vector<256x128xbf16>,
    return
  }
  func.func @transform_0(%arg0: i32, %arg1: i32) -> (i32, i32) {
    %c0_i32 = arith.constant 0 : i32
    %c0_i32_0 = arith.constant 0 : i32
    return %arg0, %c0_i32 : i32, i32
  }
  func.func @transform_1(%arg0: i32, %arg1: i32) -> (i32, i32) {
    %c0_i32 = arith.constant 0 : i32
    %c0_i32_0 = arith.constant 0 : i32
    return %c0_i32, %arg1 : i32, i32
  }
  func.func @transform_2(%arg0: i32, %arg1: i32) -> (i32, i32) {
    %c0_i32 = arith.constant 0 : i32
    %c0_i32_0 = arith.constant 0 : i32
    return %c0_i32, %arg1 : i32, i32
  }
  func.func @transform_3(%arg0: i32, %arg1: i32) -> (i32, i32) {
    %c0_i32 = arith.constant 0 : i32
    return %arg0, %arg1 : i32, i32
  }
}

</mosaic_0001>

<bundles_post_ra>
// kernel: tpu_custom_call.1
= control target key start
LH: loop header
LB: loop body
LE: loop exit
PB: predicated region body
PF: predicated region fallthrough
CT: control target
= control target key end

     0   :  { %8 = vsyncpa [#allocation3], 0  ;;  %s1029_s0 = inlined_call_operand.hbm [shape: bf16[256,128], index: 0, kind: input, shape index: {}]   ;;  %s1030_s1 = inlined_call_operand.hbm [shape: bf16[128,128], index: 1, kind: input, shape index: {}]   ;;  %s1031_s2 = inlined_call_operand.vmem [shape: f32[1,128], index: 2, kind: input, shape index: {}]   ;;  %s1032_s3 = inlined_call_operand.hbm [shape: bf16[256,128], index: 3, kind: output, shape index: {}]  }
   0x1   :  { %9 = vsyncpa [#allocation6], 0 }
   0x2   :  { %10 = vsyncpa [#allocation4], 0  ;;  %s949_s12 = smov [#allocation2]  }
   0x3   :  { %s16_s13 = sshll.u32 %s949_s12, 4  ;;  %s17_s13 = int_to_ptr.vmem [resolvable:$true] %s16_s13 }
   0x4   :  { %s891_s14 = scalar_lea.vmem %s17_s13, 2048  ;;  %p896_p1 = scmp.lt.s32.totalorder %s17_s13, %s17_s13 }
   0x5   :  { %p892_p0 = scmp.ne.s32.totalorder %s17_s13, %s891_s14  ;;  %p897_p2 = scmp.lt.s32.totalorder %s891_s14, %s891_s14 }
   0x7   :  { %p898_p3 = por %p897_p2, %p896_p1 }
   0x9   :  { %p899_p4 = pnand %p898_p3, %p892_p0 }
   0xb   :  { %902 = shalt.err (!%p899_p4)
}
   0xc   :  { %s950_s15 = smov 64   ;;  %s951_s16 = smov 4  }
   0xd   :  { %22 = dma.hbm_to_vmem [thread:$0]  %s1029_s0, 2048, %s17_s13, [#allocation3], %s950_s15, %s950_s15, %s951_s16  }
   0xe   :  { %s952_s19 = smov [#allocation5]  }
   0xf   :  { %s28_s20 = sshll.u32 %s952_s19, 4  ;;  %s29_s20 = int_to_ptr.vmem [resolvable:$true] %s28_s20 }
  0x10   :  { %s911_s21 = scalar_lea.vmem %s29_s20, 1024  ;;  %p916_p6 = scmp.lt.s32.totalorder %s29_s20, %s29_s20 }
  0x11   :  { %p912_p5 = scmp.ne.s32.totalorder %s29_s20, %s911_s21  ;;  %p917_p7 = scmp.lt.s32.totalorder %s911_s21, %s911_s21 }
  0x13   :  { %p918_p8 = por %p917_p7, %p916_p6 }
  0x15   :  { %p919_p9 = pnand %p918_p8, %p912_p5 }
  0x17   :  { %922 = shalt.err (!%p919_p9)
}
  0x18   :  { %34 = dma.hbm_to_vmem [thread:$0]  %s1030_s1, 1024, %s29_s20, [#allocation6], %s950_s15, %s950_s15, %s951_s16  }
  0x19   :  { %943 = dma.done.wait [#allocation3], 2048  }
  0x1a   :  { %944 = vsyncadd [#allocation3], 4294965248 }
  0x1b   :  { %945 = dma.done.wait [#allocation6], 1024  }
  0x1c   :  { %946 = vsyncadd [#allocation6], 4294966272  ;;  %v859_v0 = vld [vmem:[#allocation5 + $0x38] sm:$0xff]   ;;  %v860_v1 = vld [vmem:[#allocation5 + $0x30] sm:$0xff]  }
  0x1d   :  { %790 = vmatprep.subr.bf16.mxu0 %v859_v0  ;;  %838 = vmatprep.subr.bf16.mxu1 %v859_v0  ;;  %v861_v2 = vld [vmem:[#allocation5 + $0x28] sm:$0xff]   ;;  %v862_v3 = vld [vmem:[#allocation5 + $0x20] sm:$0xff]   ;;  %v863_v6 = vld [vmem:[#allocation5 + $0x18] sm:$0xff]  }
  0x1e   :  { %791 = vmatpush3.bf16.msra.mxu0 %v859_v0  ;;  %846 = vmatpush3.bf16.msra.mxu1 %v859_v0  ;;  %v867_v4 = vld [vmem:[#allocation2] sm:$0xff]   ;;  %v864_v7 = vld [vmem:[#allocation5 + $0x10] sm:$0xff]   ;;  %v865_v8 = vld [vmem:[#allocation5 + $0x8] sm:$0xff]  }
  0x1f   :  { %792 = vmatprep.subr.bf16.mxu0 %v860_v1  ;;  %839 = vmatprep.subr.bf16.mxu1 %v860_v1  ;;  %v868_v5 = vld [vmem:[#allocation2 + $0x40] sm:$0xff]   ;;  %v869_v10 = vld [vmem:[#allocation2 + $0x8] sm:$0xff]   ;;  %v871_v12 = vld [vmem:[#allocation2 + $0x10] sm:$0xff]  }
  0x20   :  { %806 = vmatprep.mubr.bf16.mxu0 %v867_v4  ;;  %822 = vmatprep.mubr.bf16.mxu1 %v868_v5  ;;  %v866_v9 = vld [vmem:[#allocation5] sm:$0xff]   ;;  %v870_v11 = vld [vmem:[#allocation2 + $0x48] sm:$0xff]   ;;  %v872_v13 = vld [vmem:[#allocation2 + $0x50] sm:$0xff]  }
  0x21   :  { %v873_v14 = vld [vmem:[#allocation2 + $0x18] sm:$0xff]   ;;  %v875_v16 = vld [vmem:[#allocation2 + $0x20] sm:$0xff]   ;;  %v877_v18 = vld [vmem:[#allocation2 + $0x28] sm:$0xff]  }
  0x22   :  { %793 = vmatpush3.bf16.msra.mxu0 %v860_v1  ;;  %847 = vmatpush3.bf16.msra.mxu1 %v860_v1  ;;  %v874_v15 = vld [vmem:[#allocation2 + $0x58] sm:$0xff]   ;;  %v876_v17 = vld [vmem:[#allocation2 + $0x60] sm:$0xff]   ;;  %v878_v19 = vld [vmem:[#allocation2 + $0x68] sm:$0xff]  }
  0x23   :  { %794 = vmatprep.subr.bf16.mxu0 %v861_v2  ;;  %840 = vmatprep.subr.bf16.mxu1 %v861_v2  ;;  %v879_v20 = vld [vmem:[#allocation2 + $0x30] sm:$0xff]   ;;  %v881_v22 = vld [vmem:[#allocation2 + $0x38] sm:$0xff]   ;;  %v989_v26 = vld [vmem:[%s1031_s2] ss:$0 sm:$0xff]  ;;  %s953_s2 = smov [#allocation7]  }
  0x24   :  { %v880_v21 = vld [vmem:[#allocation2 + $0x70] sm:$0xff]   ;;  %v882_v23 = vld [vmem:[#allocation2 + $0x78] sm:$0xff]   ;;  %s569_s24 = sshll.u32 %s953_s2, 4  ;;  %s570_s24 = int_to_ptr.vmem [resolvable:$true] %s569_s24 }
  0x25   :  { %s923_s25 = scalar_lea.vmem %s570_s24, 2048  ;;  %p928_p11 = scmp.lt.s32.totalorder %s570_s24, %s570_s24 }
  0x26   :  { %795 = vmatpush3.bf16.msra.mxu0 %v861_v2  ;;  %848 = vmatpush3.bf16.msra.mxu1 %v861_v2  ;;  %p924_p10 = scmp.ne.s32.totalorder %s570_s24, %s923_s25  ;;  %p929_p12 = scmp.lt.s32.totalorder %s923_s25, %s923_s25 }
  0x27   :  { %796 = vmatprep.subr.bf16.mxu0 %v862_v3  ;;  %841 = vmatprep.subr.bf16.mxu1 %v862_v3 }
  0x28   :  { %p930_p13 = por %p929_p12, %p928_p11 }
  0x2a   :  { %797 = vmatpush3.bf16.msra.mxu0 %v862_v3  ;;  %849 = vmatpush3.bf16.msra.mxu1 %v862_v3  ;;  %p931_p0 = pnand %p930_p13, %p924_p10 }
  0x2b   :  { %798 = vmatprep.subr.bf16.mxu0 %v863_v6  ;;  %842 = vmatprep.subr.bf16.mxu1 %v863_v6 }
  0x2e   :  { %799 = vmatpush3.bf16.msra.mxu0 %v863_v6  ;;  %850 = vmatpush3.bf16.msra.mxu1 %v863_v6 }
  0x2f   :  { %800 = vmatprep.subr.bf16.mxu0 %v864_v7  ;;  %843 = vmatprep.subr.bf16.mxu1 %v864_v7 }
  0x32   :  { %801 = vmatpush3.bf16.msra.mxu0 %v864_v7  ;;  %851 = vmatpush3.bf16.msra.mxu1 %v864_v7 }
  0x33   :  { %802 = vmatprep.subr.bf16.mxu0 %v865_v8  ;;  %844 = vmatprep.subr.bf16.mxu1 %v865_v8 }
  0x36   :  { %803 = vmatpush3.bf16.msra.mxu0 %v865_v8  ;;  %852 = vmatpush3.bf16.msra.mxu1 %v865_v8 }
  0x37   :  { %804 = vmatprep.subr.bf16.mxu0 %v866_v9  ;;  %845 = vmatprep.subr.bf16.mxu1 %v866_v9 }
  0x3a   :  { %805 = vmatpush3.bf16.msra.mxu0 %v866_v9  ;;  %853 = vmatpush3.bf16.msra.mxu1 %v866_v9 }
  0x3d   :  { %807 = vmatmul.mubr.bf16.vlgmr.msra.gmra.mxu0 %v869_v10  ;;  %823 = vmatmul.mubr.bf16.vlgmr.msra.gmra.mxu1 %v870_v11 }
  0x3e   :  { %810 = vmatprep.mubr.bf16.mxu0 %v871_v12  ;;  %826 = vmatprep.mubr.bf16.mxu1 %v872_v13 }
  0x45   :  { %811 = vmatmul.mubr.bf16.gmra.mxu0 %v873_v14  ;;  %827 = vmatmul.mubr.bf16.gmra.mxu1 %v874_v15 }
  0x46   :  { %814 = vmatprep.mubr.bf16.mxu0 %v875_v16  ;;  %830 = vmatprep.mubr.bf16.mxu1 %v876_v17 }
  0x4d   :  { %815 = vmatmul.mubr.bf16.gmra.mxu0 %v877_v18  ;;  %831 = vmatmul.mubr.bf16.gmra.mxu1 %v878_v19 }
  0x4e   :  { %818 = vmatprep.mubr.bf16.mxu0 %v879_v20  ;;  %834 = vmatprep.mubr.bf16.mxu1 %v880_v21 }
  0x55   :  { %819 = vmatmul.mubr.bf16.gmra.mxu0 %v881_v22  ;;  %835 = vmatmul.mubr.bf16.gmra.mxu1 %v882_v23 }
  0xfd   :  { %v808_v24 = vpop.f32.mrf.mxu0  ;;  %v824_v25 = vpop.f32.mrf.mxu1 }
  0xfe   :  { %v286_v31 = vadd.f32 %v808_v24, %v989_v26  ;;  %v350_v32 = vadd.f32 %v824_v25, %v989_v26 }
  0xff   :  { %v277_v27 = vpop.f32.mrf.mxu0  ;;  %v341_v28 = vpop.f32.mrf.mxu1 }
 0x100   :  { %v278_v35 = vadd.f32 %v989_v26, %v277_v27  ;;  %v342_v36 = vadd.f32 %v989_v26, %v341_v28 }
 0x101   :  { %v809_v29 = vpop.f32.mrf.mxu0  ;;  %v825_v30 = vpop.f32.mrf.mxu1 }
 0x102   :  { %v289_v33 = vadd.f32 %v809_v29, %v989_v26  ;;  %v353_v34 = vadd.f32 %v825_v30, %v989_v26 }
 0x103   :  { %v280_v37 = vpop.f32.mrf.mxu0  ;;  %v344_v38 = vpop.f32.mrf.mxu1 }
 0x104   :  { %v679_v39 = vpack.c.bf16 %v289_v33, %v286_v31  ;;  %v719_v40 = vpack.c.bf16 %v353_v34, %v350_v32  ;;  %v281_v41 = vadd.f32 %v989_v26, %v280_v37  ;;  %v345_v42 = vadd.f32 %v989_v26, %v344_v38 }
 0x105   :  { %v812_v43 = vpop.f32.mrf.mxu0  ;;  %v828_v44 = vpop.f32.mrf.mxu1 }
 0x106   :  { %751 = vst [vmem:[#allocation7 + $0x8] sm:$0xff] %v679_v39   ;;  %759 = vst [vmem:[#allocation7 + $0x48] sm:$0xff] %v719_v40   ;;  %v674_v45 = vpack.c.bf16 %v281_v41, %v278_v35  ;;  %v714_v46 = vpack.c.bf16 %v345_v42, %v342_v36  ;;  %v302_v51 = vadd.f32 %v812_v43, %v989_v26 }
 0x107   :  { %v293_v47 = vpop.f32.mrf.mxu0  ;;  %v357_v48 = vpop.f32.mrf.mxu1  ;;  %v366_v52 = vadd.f32 %v828_v44, %v989_v26 }
 0x108   :  { %675 = vst [vmem:[#allocation7] sm:$0xff] %v674_v45   ;;  %758 = vst [vmem:[#allocation7 + $0x40] sm:$0xff] %v714_v46   ;;  %v294_v55 = vadd.f32 %v989_v26, %v293_v47  ;;  %v358_v56 = vadd.f32 %v989_v26, %v357_v48 }
 0x109   :  { %v813_v49 = vpop.f32.mrf.mxu0  ;;  %v829_v50 = vpop.f32.mrf.mxu1 }
 0x10a   :  { %v305_v53 = vadd.f32 %v813_v49, %v989_v26  ;;  %v369_v54 = vadd.f32 %v829_v50, %v989_v26 }
 0x10b   :  { %v296_v57 = vpop.f32.mrf.mxu0  ;;  %v360_v58 = vpop.f32.mrf.mxu1 }
 0x10c   :  { %v689_v59 = vpack.c.bf16 %v305_v53, %v302_v51  ;;  %v729_v60 = vpack.c.bf16 %v369_v54, %v366_v52  ;;  %v297_v61 = vadd.f32 %v989_v26, %v296_v57  ;;  %v361_v62 = vadd.f32 %v989_v26, %v360_v58 }
 0x10d   :  { %v816_v63 = vpop.f32.mrf.mxu0  ;;  %v832_v0 = vpop.f32.mrf.mxu1 }
 0x10e   :  { %753 = vst [vmem:[#allocation7 + $0x18] sm:$0xff] %v689_v59   ;;  %761 = vst [vmem:[#allocation7 + $0x58] sm:$0xff] %v729_v60   ;;  %v684_v1 = vpack.c.bf16 %v297_v61, %v294_v55  ;;  %v724_v2 = vpack.c.bf16 %v361_v62, %v358_v56  ;;  %v318_v7 = vadd.f32 %v816_v63, %v989_v26 }
 0x10f   :  { %v309_v3 = vpop.f32.mrf.mxu0  ;;  %v373_v4 = vpop.f32.mrf.mxu1  ;;  %v382_v8 = vadd.f32 %v832_v0, %v989_v26 }
 0x110   :  { %752 = vst [vmem:[#allocation7 + $0x10] sm:$0xff] %v684_v1   ;;  %760 = vst [vmem:[#allocation7 + $0x50] sm:$0xff] %v724_v2   ;;  %v310_v11 = vadd.f32 %v989_v26, %v309_v3  ;;  %v374_v12 = vadd.f32 %v989_v26, %v373_v4 }
 0x111   :  { %v817_v5 = vpop.f32.mrf.mxu0  ;;  %v833_v6 = vpop.f32.mrf.mxu1 }
 0x112   :  { %v321_v9 = vadd.f32 %v817_v5, %v989_v26  ;;  %v385_v10 = vadd.f32 %v833_v6, %v989_v26 }
 0x113   :  { %v312_v13 = vpop.f32.mrf.mxu0  ;;  %v376_v14 = vpop.f32.mrf.mxu1 }
 0x114   :  { %v699_v15 = vpack.c.bf16 %v321_v9, %v318_v7  ;;  %v739_v16 = vpack.c.bf16 %v385_v10, %v382_v8  ;;  %v313_v17 = vadd.f32 %v989_v26, %v312_v13  ;;  %v377_v18 = vadd.f32 %v989_v26, %v376_v14 }
 0x115   :  { %v820_v19 = vpop.f32.mrf.mxu0  ;;  %v836_v20 = vpop.f32.mrf.mxu1 }
 0x116   :  { %755 = vst [vmem:[#allocation7 + $0x28] sm:$0xff] %v699_v15   ;;  %763 = vst [vmem:[#allocation7 + $0x68] sm:$0xff] %v739_v16   ;;  %v694_v21 = vpack.c.bf16 %v313_v17, %v310_v11  ;;  %v734_v22 = vpack.c.bf16 %v377_v18, %v374_v12  ;;  %v334_v28 = vadd.f32 %v820_v19, %v989_v26 }
 0x117   :  { %v325_v23 = vpop.f32.mrf.mxu0  ;;  %v389_v24 = vpop.f32.mrf.mxu1  ;;  %v398_v29 = vadd.f32 %v836_v20, %v989_v26 }
 0x118   :  { %754 = vst [vmem:[#allocation7 + $0x20] sm:$0xff] %v694_v21   ;;  %762 = vst [vmem:[#allocation7 + $0x60] sm:$0xff] %v734_v22   ;;  %v326_v32 = vadd.f32 %v989_v26, %v325_v23  ;;  %v390_v33 = vadd.f32 %v989_v26, %v389_v24 }
 0x119   :  { %v821_v25 = vpop.f32.mrf.mxu0  ;;  %v837_v27 = vpop.f32.mrf.mxu1 }
 0x11a   :  { %v337_v30 = vadd.f32 %v821_v25, %v989_v26  ;;  %v401_v31 = vadd.f32 %v837_v27, %v989_v26 }
 0x11b   :  { %v328_v34 = vpop.f32.mrf.mxu0  ;;  %v392_v35 = vpop.f32.mrf.mxu1 }
 0x11c   :  { %v709_v36 = vpack.c.bf16 %v337_v30, %v334_v28  ;;  %v749_v37 = vpack.c.bf16 %v401_v31, %v398_v29  ;;  %v329_v38 = vadd.f32 %v989_v26, %v328_v34  ;;  %v393_v39 = vadd.f32 %v989_v26, %v392_v35 }
 0x11e   :  { %757 = vst [vmem:[#allocation7 + $0x38] sm:$0xff] %v709_v36   ;;  %765 = vst [vmem:[#allocation7 + $0x78] sm:$0xff] %v749_v37   ;;  %v704_v40 = vpack.c.bf16 %v329_v38, %v326_v32  ;;  %v744_v41 = vpack.c.bf16 %v393_v39, %v390_v33 }
 0x120   :  { %756 = vst [vmem:[#allocation7 + $0x30] sm:$0xff] %v704_v40   ;;  %764 = vst [vmem:[#allocation7 + $0x70] sm:$0xff] %v744_v41  }
 0x121   :  { %934 = shalt.err (!%p931_p0)
}
 0x122   :  { %575 = dma.vmem_to_hbm [thread:$0]  %s570_s24, 2048, %s1032_s3, [#allocation4], %s950_s15, %s950_s15, %s951_s16  }
 0x123   :  { %947 = dma.done.wait [#allocation4], 2048  }
 0x124   :  { %948 = vsyncadd [#allocation4], 4294965248 }
 0x125   :  { %579 = vsyncpa [#allocation3], 1 }
 0x126   :  { %580 = vsyncpa [#allocation6], 1 }
 0x127   :  { %581 = vsyncpa [#allocation4], 1 }

</bundles_post_ra>
